<compile_context>
chip_gen: v7x
topology: tpu7x:2x2x1
jax: 0.10.0
libtpu: 0.0.40
codegen_flags: <defaults>
</compile_context>

<pallas_src>
import jax
import jax.numpy as jnp
from jax.experimental import pallas as pl
from jax.experimental.pallas import tpu as pltpu

SMOOTH = 1e-15
LANES = 128
MAX_TILE_ROWS = 4096  # (4096, 128) f32 block = 2 MiB per input pipeline buffer.


def _make_dice_kernel(rows, tile_rows, acc_rows, fold, needs_mask):
    """Builds the kernel with static tiling parameters baked in."""

    def kernel(yt_ref, yp_ref, out_ref, acc_i, acc_s):
        step = pl.program_id(0)
        last = pl.num_programs(0) - 1

        @pl.when(step == 0)
        def _():
            acc_i[...] = jnp.zeros_like(acc_i)
            acc_s[...] = jnp.zeros_like(acc_s)

        # Upcast in-kernel: inputs travel HBM->VMEM at their native width.
        yt = yt_ref[...].astype(jnp.float32)
        yp = yp_ref[...].astype(jnp.float32)

        def accumulate(yt_t, yp_t):
            # Fold the tile's row dim onto the (acc_rows, 128) accumulators:
            # per-step this is only vreg adds (VPU) -- no cross-lane reduce
            # and no vector->scalar round trip inside the pipelined loop.
            # Denominator uses sum(yt)+sum(yp) == sum(yt+yp) -> 2 accumulators.
            acc_i[...] += (yt_t * yp_t).reshape(fold, acc_rows, LANES).sum(axis=0)
            acc_s[...] += (yt_t + yp_t).reshape(fold, acc_rows, LANES).sum(axis=0)

        if needs_mask:
            # Only the last grid block overhangs the array, so the mask (iota,
            # compares, selects) is built and applied only on that step.
            @pl.when(step != last)
            def _():
                accumulate(yt, yp)

            @pl.when(step == last)
            def _():
                row_idx = jax.lax.broadcasted_iota(jnp.int32, (tile_rows, LANES), 0)
                valid = (row_idx + step * tile_rows) < rows
                # jnp.where so that any unspecified pad bits (even NaN) vanish.
                accumulate(jnp.where(valid, yt, 0.0), jnp.where(valid, yp, 0.0))
        else:
            accumulate(yt, yp)

        @pl.when(step == last)
        def _():
            inter = jnp.sum(acc_i[...])
            denom = jnp.sum(acc_s[...])
            out_ref[0, 0] = 1.0 - (2.0 * inter + SMOOTH) / (denom + SMOOTH)

    return kernel


def dice_loss(y_true, y_pred):
    """Pallas implementation of DiceLoss.forward(y_true, y_pred) -> scalar."""
    yt = jnp.ravel(y_true)
    yp = jnp.ravel(y_pred)
    n = yt.shape[0]

    # Only pad when n is not lane-aligned (<=127 zero elements, sum-neutral).
    # Typical NCHW image tensors hit the copy-free path (ravel+reshape only).
    if n % LANES != 0:
        pad = LANES - (n % LANES)
        yt = jnp.pad(yt, (0, pad))
        yp = jnp.pad(yp, (0, pad))

    rows = yt.shape[0] // LANES
    yt2 = yt.reshape(rows, LANES)
    yp2 = yp.reshape(rows, LANES)

    tile_rows = MAX_TILE_ROWS if rows > MAX_TILE_ROWS else rows
    n_steps = (rows + tile_rows - 1) // tile_rows
    needs_mask = (rows % tile_rows) != 0

    if tile_rows % 8 == 0:
        acc_rows, fold = 8, tile_rows // 8
    else:  # single-block case with a small, non-8-aligned row count
        acc_rows, fold = tile_rows, 1

    kernel = _make_dice_kernel(rows, tile_rows, acc_rows, fold, needs_mask)

    out = pl.pallas_call(
        kernel,
        out_shape=jax.ShapeDtypeStruct((1, 1), jnp.float32),
        grid_spec=pltpu.PrefetchScalarGridSpec(
            num_scalar_prefetch=0,
            grid=(n_steps,),
            in_specs=[
                pl.BlockSpec((tile_rows, LANES), lambda i: (i, 0)),
                pl.BlockSpec((tile_rows, LANES), lambda i: (i, 0)),
            ],
            out_specs=pl.BlockSpec(memory_space=pltpu.SMEM),
            scratch_shapes=[
                pltpu.VMEM((acc_rows, LANES), jnp.float32),
                pltpu.VMEM((acc_rows, LANES), jnp.float32),
            ],
        ),
        compiler_params=pltpu.CompilerParams(
            dimension_semantics=("arbitrary",),
        ),
    )(yt2, yp2)
    return out[0, 0]


def _dice_loss_ref(y_true, y_pred):
    yt = jnp.ravel(y_true).astype(jnp.float32)
    yp = jnp.ravel(y_pred).astype(jnp.float32)
    inter = jnp.sum(yt * yp)
    return 1.0 - (2.0 * inter + SMOOTH) / (jnp.sum(yt) + jnp.sum(yp) + SMOOTH)


if __name__ == "__main__":
    key = jax.random.PRNGKey(0)

    # Primary test: small NCHW-like mask/prediction pair (single block).
    k1, k2 = jax.random.split(key)
    y_true = (jax.random.uniform(k1, (2, 4, 16, 16)) > 0.5).astype(jnp.float32)
    y_pred = jax.random.uniform(k2, (2, 4, 16, 16), dtype=jnp.float32)
    loss = jax.block_until_ready(dice_loss(y_true, y_pred))
    ref = jax.block_until_ready(_dice_loss_ref(y_true, y_pred))
    assert jnp.allclose(loss, ref, atol=1e-6, rtol=1e-6), (loss, ref)

    # Secondary test: exercises the multi-tile grid + last-step row-masking
    # path (rows = 5120 -> two (4096, 128) blocks, last one partial).
    k3, k4 = jax.random.split(k2)
    y_true2 = (jax.random.uniform(k3, (2, 4, 320, 256)) > 0.5).astype(jnp.float32)
    y_pred2 = jax.random.uniform(k4, (2, 4, 320, 256), dtype=jnp.float32)
    loss2 = jax.block_until_ready(dice_loss(y_true2, y_pred2))
    ref2 = jax.block_until_ready(_dice_loss_ref(y_true2, y_pred2))
    assert jnp.allclose(loss2, ref2, atol=1e-5, rtol=1e-5), (loss2, ref2)

    # Third test: non-lane-aligned element count (tiny pad branch) with a
    # small, non-8-aligned single block.
    k5, k6 = jax.random.split(k4)
    y_true3 = (jax.random.uniform(k5, (3, 1, 12, 16)) > 0.5).astype(jnp.float32)
    y_pred3 = jax.random.uniform(k6, (3, 1, 12, 16), dtype=jnp.float32)
    loss3 = jax.block_until_ready(dice_loss(y_true3, y_pred3))
    ref3 = jax.block_until_ready(_dice_loss_ref(y_true3, y_pred3))
    assert jnp.allclose(loss3, ref3, atol=1e-6, rtol=1e-6), (loss3, ref3)

    print("KERNEL_OK")
</pallas_src>

<mosaic_0001>
module attributes {stable_mosaic.version = 11 : i64} {
  func.func @kernel(%arg0: i32, %arg1: memref<16x128xf32, #tpu.memory_space<vmem>>, %arg2: memref<16x128xf32, #tpu.memory_space<vmem>>, %arg3: memref<1x1xf32, #tpu.memory_space<smem>>, %arg4: memref<8x128xf32, #tpu.memory_space<vmem>>, %arg5: memref<8x128xf32, #tpu.memory_space<vmem>>) attributes {dimension_semantics = [#tpu.dimension_semantics<arbitrary>], iteration_bounds = array<i64: 1>, scalar_prefetch = 0 : i64, scratch_operands = 2 : i64, tpu.core_type = #tpu.core_type<tc>, window_params = [{transform_indices = @transform_0, window_bounds = array<i64: 16, 128>}, {transform_indices = @transform_1, window_bounds = array<i64: 16, 128>}, {transform_indices = @transform_2, window_bounds = array<i64: 1, 1>}]} {
    %c0_i32 = arith.constant 0 : i32
    %0 = arith.cmpi eq, %arg0, %c0_i32 : i32
    %1 = arith.extui %0 : i1 to i32
    %c0_i32_0 = arith.constant 0 : i32
    %2 = arith.cmpi ne, %1, %c0_i32_0 : i32
    scf.if %2 {
      %cst_15 = arith.constant 0.000000e+00 : f32
      %20 = vector.broadcast %cst_15 : f32 to vector<8x128xf32>
      %c0_16 = arith.constant 0 : index
      %c0_17 = arith.constant 0 : index
      %21 = vector.load %arg4[%c0_16, %c0_17] : memref<8x128xf32, #tpu.memory_space<vmem>>, vector<8x128xf32>
      tpu.vector_store %arg4[%c0_16, %c0_17], %20 {strides = array<i32>} : memref<8x128xf32, #tpu.memory_space<vmem>>, vector<8x128xf32>,
      %cst_18 = arith.constant 0.000000e+00 : f32
      %22 = vector.broadcast %cst_18 : f32 to vector<8x128xf32>
      %c0_19 = arith.constant 0 : index
      %c0_20 = arith.constant 0 : index
      %23 = vector.load %arg5[%c0_19, %c0_20] : memref<8x128xf32, #tpu.memory_space<vmem>>, vector<8x128xf32>
      tpu.vector_store %arg5[%c0_19, %c0_20], %22 {strides = array<i32>} : memref<8x128xf32, #tpu.memory_space<vmem>>, vector<8x128xf32>,
    } else {
    }
    %c0 = arith.constant 0 : index
    %c0_1 = arith.constant 0 : index
    %3 = vector.load %arg1[%c0, %c0_1] : memref<16x128xf32, #tpu.memory_space<vmem>>, vector<16x128xf32>
    %c0_2 = arith.constant 0 : index
    %c0_3 = arith.constant 0 : index
    %4 = vector.load %arg2[%c0_2, %c0_3] : memref<16x128xf32, #tpu.memory_space<vmem>>, vector<16x128xf32>
    %c0_4 = arith.constant 0 : index
    %c0_5 = arith.constant 0 : index
    %5 = vector.load %arg4[%c0_4, %c0_5] : memref<8x128xf32, #tpu.memory_space<vmem>>, vector<8x128xf32>
    %6 = arith.mulf %3, %4 : vector<16x128xf32>
    %7 = vector.shape_cast %6 : vector<16x128xf32> to vector<2x8x128xf32>
    %cst = arith.constant dense<0.000000e+00> : vector<8x128xf32>
    %8 = vector.multi_reduction <add>, %7, %cst [0] : vector<2x8x128xf32> to vector<8x128xf32>
    %9 = arith.addf %5, %8 : vector<8x128xf32>
    %c0_6 = arith.constant 0 : index
    %c0_7 = arith.constant 0 : index
    %10 = vector.load %arg4[%c0_6, %c0_7] : memref<8x128xf32, #tpu.memory_space<vmem>>, vector<8x128xf32>
    tpu.vector_store %arg4[%c0_6, %c0_7], %9 {strides = array<i32>} : memref<8x128xf32, #tpu.memory_space<vmem>>, vector<8x128xf32>,
    %c0_8 = arith.constant 0 : index
    %c0_9 = arith.constant 0 : index
    %11 = vector.load %arg5[%c0_8, %c0_9] : memref<8x128xf32, #tpu.memory_space<vmem>>, vector<8x128xf32>
    %12 = arith.addf %3, %4 : vector<16x128xf32>
    %13 = vector.shape_cast %12 : vector<16x128xf32> to vector<2x8x128xf32>
    %cst_10 = arith.constant dense<0.000000e+00> : vector<8x128xf32>
    %14 = vector.multi_reduction <add>, %13, %cst_10 [0] : vector<2x8x128xf32> to vector<8x128xf32>
    %15 = arith.addf %11, %14 : vector<8x128xf32>
    %c0_11 = arith.constant 0 : index
    %c0_12 = arith.constant 0 : index
    %16 = vector.load %arg5[%c0_11, %c0_12] : memref<8x128xf32, #tpu.memory_space<vmem>>, vector<8x128xf32>
    tpu.vector_store %arg5[%c0_11, %c0_12], %15 {strides = array<i32>} : memref<8x128xf32, #tpu.memory_space<vmem>>, vector<8x128xf32>,
    %c0_i32_13 = arith.constant 0 : i32
    %17 = arith.cmpi eq, %arg0, %c0_i32_13 : i32
    %18 = arith.extui %17 : i1 to i32
    %c0_i32_14 = arith.constant 0 : i32
    %19 = arith.cmpi ne, %18, %c0_i32_14 : i32
    scf.if %19 {
      %c0_15 = arith.constant 0 : index
      %c0_16 = arith.constant 0 : index
      %20 = vector.load %arg4[%c0_15, %c0_16] : memref<8x128xf32, #tpu.memory_space<vmem>>, vector<8x128xf32>
      %21 = vector.shape_cast %20 : vector<8x128xf32> to vector<1x8x128xf32>
      %cst_17 = arith.constant dense<0.000000e+00> : vector<1xf32>
      %22 = vector.multi_reduction <add>, %21, %cst_17 [1, 2] : vector<1x8x128xf32> to vector<1xf32>
      %23 = vector.shape_cast %22 : vector<1xf32> to vector<1x1x1xf32>
      %24 = vector.extract %23[0, 0, 0] : f32 from vector<1x1x1xf32>
      %c0_18 = arith.constant 0 : index
      %c0_19 = arith.constant 0 : index
      %25 = vector.load %arg5[%c0_18, %c0_19] : memref<8x128xf32, #tpu.memory_space<vmem>>, vector<8x128xf32>
      %26 = vector.shape_cast %25 : vector<8x128xf32> to vector<1x8x128xf32>
      %cst_20 = arith.constant dense<0.000000e+00> : vector<1xf32>
      %27 = vector.multi_reduction <add>, %26, %cst_20 [1, 2] : vector<1x8x128xf32> to vector<1xf32>
      %28 = vector.shape_cast %27 : vector<1xf32> to vector<1x1x1xf32>
      %29 = vector.extract %28[0, 0, 0] : f32 from vector<1x1x1xf32>
      %cst_21 = arith.constant 2.000000e+00 : f32
      %30 = arith.mulf %cst_21, %24 : f32
      %cst_22 = arith.constant 1.000000e-15 : f32
      %31 = arith.addf %30, %cst_22 : f32
      %cst_23 = arith.constant 1.000000e-15 : f32
      %32 = arith.addf %29, %cst_23 : f32
      %33 = arith.divf %31, %32 : f32
      %cst_24 = arith.constant 1.000000e+00 : f32
      %34 = arith.subf %cst_24, %33 : f32
      %c0_25 = arith.constant 0 : index
      %c0_26 = arith.constant 0 : index
      %35 = memref.load %arg3[%c0_25, %c0_26] : memref<1x1xf32, #tpu.memory_space<smem>>
      memref.store %34, %arg3[%c0_25, %c0_26] : memref<1x1xf32, #tpu.memory_space<smem>>
    } else {
    }
    return
  }
  func.func @transform_0(%arg0: i32) -> (i32, i32) {
    %c0_i32 = arith.constant 0 : i32
    %c0_i32_0 = arith.constant 0 : i32
    return %arg0, %c0_i32 : i32, i32
  }
  func.func @transform_1(%arg0: i32) -> (i32, i32) {
    %c0_i32 = arith.constant 0 : i32
    %c0_i32_0 = arith.constant 0 : i32
    return %arg0, %c0_i32 : i32, i32
  }
  func.func @transform_2(%arg0: i32) -> (i32, i32) {
    %c0_i32 = arith.constant 0 : i32
    %c0_i32_0 = arith.constant 0 : i32
    %c0_i32_1 = arith.constant 0 : i32
    return %c0_i32, %c0_i32_0 : i32, i32
  }
}

</mosaic_0001>

<bundles_post_ra>
// kernel: tpu_custom_call.1
= control target key start
LH: loop header
LB: loop body
LE: loop exit
PB: predicated region body
PF: predicated region fallthrough
CT: control target
= control target key end

     0   :  { %7 = vsyncpa [#allocation5], 0  ;;  %s239_s0 = inlined_call_operand.hbm [shape: f32[16,128], index: 0, kind: input, shape index: {}]   ;;  %s240_s1 = inlined_call_operand.hbm [shape: f32[16,128], index: 1, kind: input, shape index: {}]   ;;  %s241_s2 = inlined_call_operand.hbm [shape: f32[1,1], index: 2, kind: output, shape index: {}]  }
   0x1   :  { %8 = vsyncpa [#allocation8], 0 }
   0x2   :  { %9 = vsyncpa [#allocation6], 0  ;;  %s183_s9 = smov [#allocation4]   ;;  %s123_s13 = scalar_lea.hbm %s239_s0, 256 }
   0x3   :  { %s15_s10 = sshll.u32 %s183_s9, 4  ;;  %p124_p0 = scmp.ne.s32.totalorder %s239_s0, %s123_s13  ;;  %s16_s10 = int_to_ptr.vmem [resolvable:$true] %s15_s10 }
   0x4   :  { %p127_p1 = scmp.lt.u32.totalorder %s123_s13, %s239_s0 }
   0x6   :  { %p129_p2 = pnand %p127_p1, %p124_p0 }
   0x8   :  { %132 = shalt.err (!%p129_p2)
}
   0x9   :  { %s133_s18 = scalar_lea.vmem %s16_s10, 256  ;;  %p138_p4 = scmp.lt.s32.totalorder %s16_s10, %s16_s10 }
   0xa   :  { %p134_p3 = scmp.ne.s32.totalorder %s16_s10, %s133_s18  ;;  %p139_p5 = scmp.lt.s32.totalorder %s133_s18, %s133_s18 }
   0xc   :  { %p140_p6 = por %p139_p5, %p138_p4 }
   0xe   :  { %p141_p7 = pnand %p140_p6, %p134_p3 }
  0x10   :  { %144 = shalt.err (!%p141_p7)
}
  0x11   :  { %s184_s19 = smov 128   ;;  %s185_s20 = smov 8  }
  0x12   :  { %21 = dma.hbm_to_vmem [thread:$0]  %s239_s0, 256, %s16_s10, [#allocation5], %s184_s19, %s184_s19, %s185_s20  }
  0x13   :  { %s186_s23 = smov [#allocation7]   ;;  %s145_s27 = scalar_lea.hbm %s240_s1, 256 }
  0x14   :  { %s27_s24 = sshll.u32 %s186_s23, 4  ;;  %p146_p8 = scmp.ne.s32.totalorder %s240_s1, %s145_s27  ;;  %s28_s24 = int_to_ptr.vmem [resolvable:$true] %s27_s24 }
  0x15   :  { %p149_p9 = scmp.lt.u32.totalorder %s145_s27, %s240_s1 }
  0x17   :  { %p151_p10 = pnand %p149_p9, %p146_p8 }
  0x19   :  { %154 = shalt.err (!%p151_p10)
}
  0x1a   :  { %s155_s4 = scalar_lea.vmem %s28_s24, 256  ;;  %p160_p12 = scmp.lt.s32.totalorder %s28_s24, %s28_s24 }
  0x1b   :  { %p156_p11 = scmp.ne.s32.totalorder %s28_s24, %s155_s4  ;;  %p161_p13 = scmp.lt.s32.totalorder %s155_s4, %s155_s4 }
  0x1d   :  { %p162_p0 = por %p161_p13, %p160_p12 }
  0x1f   :  { %p163_p1 = pnand %p162_p0, %p156_p11 }
  0x21   :  { %166 = shalt.err (!%p163_p1)
}
  0x22   :  { %33 = dma.hbm_to_vmem [thread:$0]  %s240_s1, 256, %s28_s24, [#allocation8], %s184_s19, %s184_s19, %s185_s20  }
  0x23   :  { %177 = dma.done.wait [#allocation5], 256  }
  0x24   :  { %178 = vsyncadd [#allocation5], 4294967040 }
  0x25   :  { %179 = dma.done.wait [#allocation8], 256  }
  0x26   :  { %180 = vsyncadd [#allocation8], 4294967040  ;;  %v46_v0 = vld [vmem:[#allocation4] sm:$0xff]  ;;  %v47_v1 = vld [vmem:[#allocation4 + $0x8] sm:$0xff]  ;;  %s167_s15 = scalar_lea.hbm %s241_s2, 16 }
  0x27   :  { %v48_v2 = vld [vmem:[#allocation7] sm:$0xff]  ;;  %v49_v3 = vld [vmem:[#allocation7 + $0x8] sm:$0xff]  ;;  %p168_p2 = scmp.ne.s32.totalorder %s241_s2, %s167_s15  ;;  %p171_p3 = scmp.lt.u32.totalorder %s167_s15, %s241_s2 }
  0x28   :  { %v51_v4 = vmul.f32 %v48_v2, %v46_v0  ;;  %v52_v5 = vmul.f32 %v49_v3, %v47_v1  ;;  %v57_v6 = vadd.f32 %v48_v2, %v46_v0  ;;  %v58_v7 = vadd.f32 %v49_v3, %v47_v1 }
  0x29   :  { %p173_p4 = pnand %p171_p3, %p168_p2 }
  0x2a   :  { %v53_v8 = vadd.f32 %v52_v5, %v51_v4  ;;  %v59_v9 = vadd.f32 %v58_v7, %v57_v6 }
  0x2c   :  { %66 = vadd.xlane.f32.xlu0 %v53_v8 }
  0x30   :  { %76 = vadd.xlane.f32.xlu0 %v59_v9 }
  0xb9   :  { %v67_v10 = vpop.xlane.xlu0 %66 }
  0xba   :  { %v68_v11 = vrot.slane %v67_v10, 4 }
  0xbc   :  { %v69_v12 = vadd.f32 %v68_v11, %v67_v10 }
  0xbd   :  { %v77_v13 = vpop.xlane.xlu0 %76 }
  0xbe   :  { %v70_v14 = vrot.slane %v69_v12, 2  ;;  %v78_v15 = vrot.slane %v77_v13, 4 }
  0xc0   :  { %v79_v16 = vadd.f32 %v78_v15, %v77_v13  ;;  %v71_v17 = vadd.f32 %v70_v14, %v69_v12 }
  0xc2   :  { %v80_v18 = vrot.slane %v79_v16, 2  ;;  %v72_v19 = vrot.slane %v71_v17, 1 }
  0xc4   :  { %v81_v20 = vadd.f32 %v80_v18, %v79_v16  ;;  %v73_v21 = vadd.f32 %v72_v19, %v71_v17 }
  0xc6   :  { %110 = vpush %v73_v21  ;;  %v82_v22 = vrot.slane %v81_v20, 1 }
  0xc8   :  { %v83_v23 = vadd.f32 %v82_v22, %v81_v20 }
  0xca   :  { %112 = vpush %v83_v23 }
  0xf7   :  { %s111_s1 = spop %110 }
  0xf8   :  { %s85_s8 = smul.f32 2.0, %s111_s1 }
  0xfa   :  { %s86_s9 = sadd.f32 1e-15, %s85_s8 }
  0xfb   :  { %s113_s6 = spop %112 }
  0xfc   :  { %s87_s7 = sadd.f32 1e-15, %s113_s6 }
  0xfe   :  { %v88_v24 = vstv %s87_s7 }
  0xff   :  { %121 = vrcp.f32 %v88_v24 }
 0x109   :  { %v122_v25 = vpop.eup %121 }
 0x10a   :  { %114 = vpush %v122_v25 }
 0x13b   :  { %s115_s10 = spop %114 }
 0x13c   :  { %s91_s11 = smul.f32 %s115_s10, %s86_s9 }
 0x13e   :  { %s92_s12 = ssub.f32 1.0, %s91_s11 }
 0x140   :  { %94 = sst [smem:[#allocation9]] %s92_s12 }
 0x141   :  { %176 = shalt.err (!%p173_p4)
}
 0x142   :  { %s187_s20 = smov [#allocation9]  }
 0x143   :  { %102 = dma.smem_to_hbm %s187_s20, 16, %s241_s2, [#allocation6]  }
 0x144   :  { %181 = dma.done.wait [#allocation6], 16  }
 0x145   :  { %182 = vsyncadd [#allocation6], 4294967280 }
 0x146   :  { %106 = sfence }
 0x147   :  { %107 = vsyncpa [#allocation5], 1 }
 0x148   :  { %108 = vsyncpa [#allocation8], 1 }
 0x149   :  { %109 = vsyncpa [#allocation6], 1 }

</bundles_post_ra>
